<compile_context>
chip_gen: v5e
topology: v5e:2x2
jax: 0.10.0
libtpu: 0.0.40
codegen_flags: <defaults>
</compile_context>

<pallas_src>
import functools
from types import SimpleNamespace

import jax
import jax.numpy as jnp
from jax import lax
from jax.experimental import pallas as pl
from jax.experimental.pallas import tpu as pltpu

_LANE = 128
_MAX_TL = 4096           # >=512 lanes is already ~85% of HBM roofline; larger tiles
                         # mainly grow in-kernel int32 intermediates (spill risk).
_MIN_GRID_STEPS = 8      # >= ~4 steps per TensorCore on v7x's 2-core chips.
_SINGLE_PASS_ROWS = 256  # above this N, scan the reference axis in sublane chunks.


def _vmem_budget():
    """Generation-aware VMEM budgets. v7x: ~(32, 40) MiB; v5e/v6e: ~(64, 80) MiB."""
    cap = None
    try:
        cap = getattr(pltpu.get_tpu_info(), "vmem_capacity_bytes", None)
    except Exception:
        cap = None
    if not cap:
        cap = 64 * 1024 * 1024            # conservative fallback: v7x has least VMEM
    tile_budget = min(cap // 2, 96 * 1024 * 1024)
    vmem_limit = min(5 * cap // 8, 100 * 1024 * 1024)
    return int(tile_budget), int(vmem_limit)


def _per_lane_bytes(n, panel_isz, mixed_isz, max_isz, idx_isz):
    """Resident VMEM bytes per lane column, including (8,128) sublane padding of the
    1-sublane mixed/output blocks and the x2 double buffering of the pipeline."""
    n_pad = ((n + 7) // 8) * 8
    return 2 * (n_pad * panel_isz + 8 * mixed_isz + 8 * max_isz + 8 * idx_isz)


def _plan_tiles(B, A, N, L, pm1):
    """Pick lane tile TL (multiple of 128) and padded length L_pad (multiple of TL)."""
    budget, _ = _vmem_budget()
    panel_isz = 1 if pm1 else 2
    max_isz = 2 if pm1 else 4
    per_lane = _per_lane_bytes(N, panel_isz, panel_isz, max_isz, 4)
    tl = (max(_LANE, budget // per_lane) // _LANE) * _LANE
    tl = min(tl, _MAX_TL, (-(-L // _LANE)) * _LANE)
    tl = max(tl, _LANE)
    # Guarantee >= _MIN_GRID_STEPS total grid steps so v7x's two TensorCores each get
    # several steps to pipeline (v5e/v6e also want >=2-3 steps for double buffering).
    need_ltiles = -(-_MIN_GRID_STEPS // (B * A))
    if need_ltiles > 1:
        tl = min(tl, max(_LANE, (L // need_ltiles // _LANE) * _LANE))
    l_pad = -(-L // tl) * tl
    return tl, l_pad


def _pick_row_chunk(n):
    if n <= _SINGLE_PASS_ROWS:
        return n
    for c in (256, 128, 64, 32, 16, 8):
        if n % c == 0:
            return c
    return n   # awkward N: fall back to a single pass


def _first_match_idx(mixed32, panel_ref, n, chunk):
    """First reference row equal to mixed per site; sentinel n if no row matches.
    One fused min-reduction; chunked over sublanes for large N to bound live vregs."""
    sentinel = jnp.int32(n)
    num_chunks = max(1, n // chunk)
    if num_chunks == 1:
        refs = panel_ref[0, 0].astype(jnp.int32)                       # (N, TL)
        match = refs == mixed32
        rows = lax.broadcasted_iota(jnp.int32, match.shape, 0)
        return jnp.min(jnp.where(match, rows, sentinel), axis=0, keepdims=True)

    def body(c, carry):
        base = pl.multiple_of(c * chunk, chunk)
        refs = panel_ref[0, 0, pl.ds(base, chunk), :].astype(jnp.int32)
        match = refs == mixed32
        rows = lax.broadcasted_iota(jnp.int32, match.shape, 0) + base
        cand = jnp.min(jnp.where(match, rows, sentinel), axis=0, keepdims=True)
        return jnp.minimum(carry, cand)

    init = jnp.full(mixed32.shape, n, jnp.int32)
    return lax.fori_loop(0, num_chunks, body, init, unroll=(num_chunks <= 8))


def _make_kernel(pm1, n, chunk):
    def kernel(mixed_ref, panel_ref, max_ref, idx_ref):
        # mixed_ref block: (1, 1, TL); panel_ref block: (1, 1, N, TL)
        if pm1:
            # +-1 coded haplotypes: mixed*ref == +1 <=> mixed == ref, so max+argmax
            # collapses into a single "first matching row" min-reduction.
            mixed32 = mixed_ref[0].astype(jnp.int32)                   # (1, TL)
            idx = _first_match_idx(mixed32, panel_ref, n, chunk)       # (1, TL)
            found = idx < n
            max_ref[0, 0, :, :] = jnp.where(
                found, jnp.float32(1.0), jnp.float32(-1.0)).astype(max_ref.dtype)
            idx_ref[0, 0, :, :] = jnp.where(found, idx, 0)
        else:
            # Generic path: matches torch.max on arbitrary real-valued panels.
            mixed = mixed_ref[0].astype(jnp.float32)                   # (1, TL)
            refs = panel_ref[0, 0].astype(jnp.float32)                 # (N, TL)
            prod = mixed * refs
            mx = jnp.max(prod, axis=0, keepdims=True)
            rows = lax.broadcasted_iota(jnp.int32, prod.shape, 0)
            idx = jnp.min(jnp.where(prod == mx, rows, jnp.int32(n)),
                          axis=0, keepdims=True)
            idx = jnp.where(idx >= n, 0, idx)   # NaN guard: never emit the sentinel
            max_ref[0, 0, :, :] = mx.astype(max_ref.dtype)
            idx_ref[0, 0, :, :] = idx
    return kernel


@functools.partial(jax.jit, static_argnames=("pm1", "tl"))
def _xor_refmaxpool_call(mixed, panel, *, pm1, tl):
    """mixed: (B, 1, Lp); panel: (B, A, N, Lp); Lp % tl == 0, tl % 128 == 0.
    Returns maxs (B, A, 1, Lp) [bf16 if pm1 else f32] and idxs (B, A, 1, Lp) int32."""
    B, _, Lp = mixed.shape
    _, A, N, _ = panel.shape
    assert Lp % tl == 0 and tl % _LANE == 0
    max_dtype = jnp.bfloat16 if pm1 else jnp.float32
    idx_dtype = jnp.int32
    _, vmem_limit = _vmem_budget()
    kernel = _make_kernel(pm1, N, _pick_row_chunk(N))

    out_bytes = B * A * Lp * (jnp.dtype(max_dtype).itemsize
                              + jnp.dtype(idx_dtype).itemsize)
    cost = pl.CostEstimate(
        flops=2 * B * A * N * Lp,
        transcendentals=0,
        bytes_accessed=(panel.size * panel.dtype.itemsize
                        + mixed.size * mixed.dtype.itemsize + out_bytes))

    return pl.pallas_call(
        kernel,
        out_shape=(jax.ShapeDtypeStruct((B, A, 1, Lp), max_dtype),
                   jax.ShapeDtypeStruct((B, A, 1, Lp), idx_dtype)),
        grid_spec=pltpu.PrefetchScalarGridSpec(
            num_scalar_prefetch=0,
            # A innermost: the mixed haplotype block keeps the same block index
            # across ancestries, so Pallas does not re-DMA it every step.
            grid=(B, Lp // tl, A),
            in_specs=[
                pl.BlockSpec((1, 1, tl), lambda b, l, a: (b, 0, l)),
                pl.BlockSpec((1, 1, N, tl), lambda b, l, a: (b, a, 0, l)),
            ],
            out_specs=[
                pl.BlockSpec((1, 1, 1, tl), lambda b, l, a: (b, a, 0, l)),
                pl.BlockSpec((1, 1, 1, tl), lambda b, l, a: (b, a, 0, l)),
            ],
        ),
        compiler_params=pltpu.CompilerParams(
            dimension_semantics=("parallel", "parallel", "parallel"),
            vmem_limit_bytes=vmem_limit),
        cost_estimate=cost,
    )(mixed, panel)


class BaseModelPallas:
    """Mirror of BaseModel for args.ref_pooling == 'maxpool'.

    assume_pm1=True (default): +-1 fast path — int8 panel streaming and a single
    fused compare+min reduction (bit-exact for +-1 coded haplotypes); maxima come
    back as bf16.  assume_pm1=False: generic real-valued path (bf16 streaming,
    f32 maxima, two-reduction kernel, torch.max semantics).
    """
    # TODO(synk): 'topk', 'average', 'freq', 'topk-average' pooling branches are not
    #             implemented as Pallas kernels; only the default maxpool path is.

    def __init__(self, args, assume_pm1=True):
        self.args = args
        self.window_size = args.win_size
        if args.ref_pooling != 'maxpool':
            raise ValueError("only ref_pooling='maxpool' is implemented in Pallas")
        self.assume_pm1 = assume_pm1
        self._stream_dtype = jnp.int8 if assume_pm1 else jnp.bfloat16
        # The reference panel is typically fixed across many forward() calls; cache
        # its stacked / cast / padded device copy so the full-panel conversion pass
        # is paid once, not per call.  (Keyed by object identity.)
        self._panel_cache = {}

    def _prepare_panel(self, ref_panel):
        key = id(ref_panel)
        hit = self._panel_cache.get(key)
        if hit is not None:
            return hit
        B = len(ref_panel)
        ancestries = tuple(sorted(ref_panel[0].keys()))
        A = len(ancestries)
        panel = jnp.stack(
            [jnp.stack([jnp.asarray(ref_panel[b][c]) for c in ancestries])
             for b in range(B)]).astype(self._stream_dtype)            # (B, A, N, L)
        N, L = panel.shape[-2], panel.shape[-1]
        tl, l_pad = _plan_tiles(B, A, N, L, self.assume_pm1)
        if l_pad != L:
            panel = jnp.pad(panel, ((0, 0), (0, 0), (0, 0), (0, l_pad - L)))
        panel = jax.block_until_ready(panel)
        hit = (panel, ancestries, tl, l_pad, L)
        self._panel_cache[key] = hit
        return hit

    def _prepare_mixed(self, input_mixed, l_pad):
        mixed = jnp.stack([jnp.asarray(x) for x in input_mixed]
                          ).astype(self._stream_dtype)[:, None, :]      # (B, 1, L)
        L = mixed.shape[-1]
        if l_pad != L:
            mixed = jnp.pad(mixed, ((0, 0), (0, 0), (0, l_pad - L)))
        return mixed

    def forward(self, input_mixed, ref_panel):
        panel, ancestries, tl, l_pad, L = self._prepare_panel(ref_panel)
        mixed = self._prepare_mixed(input_mixed, l_pad)
        maxs, idxs = _xor_refmaxpool_call(mixed, panel, pm1=self.assume_pm1, tl=tl)
        if l_pad != L:
            maxs = maxs[..., :L]
            idxs = idxs[..., :L]
        out_ = []
        for b in range(len(input_mixed)):
            x_ = {c: maxs[b, a] for a, c in enumerate(ancestries)}      # each (1, L)
            out_.append(x_)
            out_.append({})        # x_avg: empty, as in the non-'topk-average' path
        # NOTE: torch.max returns int64 indices; int32 is returned here (N < 2^31).
        max_indices_batch = idxs[:, :, 0, :]                            # (B, A, L)
        return out_, max_indices_batch


if __name__ == "__main__":
    key = jax.random.PRNGKey(0)
    configs = [
        dict(B=2, A=2, N=16, L=1024),    # basic
        dict(B=2, A=3, N=24, L=1000),    # ragged L -> exercises the padding path
        dict(B=1, A=1, N=512, L=512),    # large N -> exercises the chunked row scan
    ]
    for cfg in configs:
        B, A, N, L = cfg["B"], cfg["A"], cfg["N"], cfg["L"]
        key, k_mix, k_ref = jax.random.split(key, 3)
        # haplotypes encoded as +-1, like the genomics inputs this model expects
        mixed_all = jnp.where(jax.random.bernoulli(k_mix, 0.5, (B, L)),
                              1.0, -1.0).astype(jnp.float32)
        refs_all = jnp.where(jax.random.bernoulli(k_ref, 0.5, (B, A, N, L)),
                             1.0, -1.0).astype(jnp.float32)
        input_mixed = [mixed_all[b] for b in range(B)]
        ref_panel = [{c: refs_all[b, a] for a, c in enumerate(range(A))}
                     for b in range(B)]
        args = SimpleNamespace(win_size=L, ref_pooling='maxpool')

        for assume_pm1 in (True, False):
            model = BaseModelPallas(args, assume_pm1=assume_pm1)
            out_, max_indices_batch = model.forward(input_mixed, ref_panel)
            max_indices_batch = jax.block_until_ready(max_indices_batch)

            # correctness check against a pure-JAX f32 reference
            for b in range(B):
                for a in range(A):
                    prod = mixed_all[b][None, :] * refs_all[b, a]
                    ref_max = jnp.max(prod, axis=0, keepdims=True)
                    ref_idx = jnp.argmax(prod, axis=0).astype(jnp.int32)
                    got_max = out_[2 * b][a].astype(jnp.float32)
                    assert got_max.shape == (1, L)
                    assert jnp.allclose(got_max, ref_max), (cfg, assume_pm1, b, a, "max")
                    assert jnp.array_equal(max_indices_batch[b, a], ref_idx), \
                        (cfg, assume_pm1, b, a, "idx")
    print("KERNEL_OK")
</pallas_src>

<mosaic_0001>
module attributes {stable_mosaic.version = 11 : i64} {
  func.func @kernel(%arg0: i32, %arg1: i32, %arg2: i32, %arg3: memref<1x1x512xi8, #tpu.memory_space<vmem>>, %arg4: memref<1x1x16x512xi8, #tpu.memory_space<vmem>>, %arg5: memref<1x1x1x512xbf16, #tpu.memory_space<vmem>>, %arg6: memref<1x1x1x512xi32, #tpu.memory_space<vmem>>) attributes {dimension_semantics = [#tpu.dimension_semantics<parallel>, #tpu.dimension_semantics<parallel>, #tpu.dimension_semantics<parallel>], iteration_bounds = array<i64: 2, 2, 2>, scalar_prefetch = 0 : i64, scratch_operands = 0 : i64, tpu.core_type = #tpu.core_type<tc>, window_params = [{transform_indices = @transform_0, window_bounds = array<i64: 1, 1, 512>}, {transform_indices = @transform_1, window_bounds = array<i64: 1, 1, 16, 512>}, {transform_indices = @transform_2, window_bounds = array<i64: 1, 1, 1, 512>}, {transform_indices = @transform_3, window_bounds = array<i64: 1, 1, 1, 512>}]} {
    %c0 = arith.constant 0 : index
    %c0_0 = arith.constant 0 : index
    %c0_1 = arith.constant 0 : index
    %0 = vector.load %arg3[%c0, %c0_0, %c0_1] : memref<1x1x512xi8, #tpu.memory_space<vmem>>, vector<1x1x512xi8>
    %1 = vector.shape_cast %0 : vector<1x1x512xi8> to vector<1x512xi8>
    %2 = arith.extsi %1 : vector<1x512xi8> to vector<1x512xi32>
    %c0_2 = arith.constant 0 : index
    %c0_3 = arith.constant 0 : index
    %c0_4 = arith.constant 0 : index
    %c0_5 = arith.constant 0 : index
    %3 = vector.load %arg4[%c0_2, %c0_3, %c0_4, %c0_5] : memref<1x1x16x512xi8, #tpu.memory_space<vmem>>, vector<1x1x16x512xi8>
    %4 = vector.shape_cast %3 : vector<1x1x16x512xi8> to vector<16x512xi8>
    %5 = arith.extsi %4 : vector<16x512xi8> to vector<16x512xi32>
    %6 = vector.broadcast %2 : vector<1x512xi32> to vector<16x512xi32>
    %7 = arith.cmpi eq, %5, %6 : vector<16x512xi32>
    %8 = tpu.iota {dimensions = array<i32: 0>} : vector<16x512xi32>
    %c16_i32 = arith.constant 16 : i32
    %9 = vector.broadcast %c16_i32 : i32 to vector<16x512xi32>
    %10 = arith.select %7, %8, %9 : vector<16x512xi1>, vector<16x512xi32>
    %cst = arith.constant dense<2147483647> : vector<512xi32>
    %11 = vector.multi_reduction <minsi>, %10, %cst [0] : vector<16x512xi32> to vector<512xi32>
    %12 = vector.shape_cast %11 : vector<512xi32> to vector<1x512xi32>
    %c16_i32_6 = arith.constant 16 : i32
    %13 = vector.broadcast %c16_i32_6 : i32 to vector<1x512xi32>
    %14 = arith.cmpi slt, %12, %13 : vector<1x512xi32>
    %cst_7 = arith.constant 1.000000e+00 : f32
    %cst_8 = arith.constant -1.000000e+00 : f32
    %15 = vector.broadcast %cst_7 : f32 to vector<1x512xf32>
    %16 = vector.broadcast %cst_8 : f32 to vector<1x512xf32>
    %17 = arith.select %14, %15, %16 : vector<1x512xi1>, vector<1x512xf32>
    %18 = arith.truncf %17 : vector<1x512xf32> to vector<1x512xbf16>
    %c0_9 = arith.constant 0 : index
    %c0_10 = arith.constant 0 : index
    %c0_11 = arith.constant 0 : index
    %c0_12 = arith.constant 0 : index
    %19 = vector.load %arg5[%c0_9, %c0_10, %c0_11, %c0_12] : memref<1x1x1x512xbf16, #tpu.memory_space<vmem>>, vector<1x1x1x512xbf16>
    %20 = vector.shape_cast %19 : vector<1x1x1x512xbf16> to vector<1x512xbf16>
    %21 = vector.shape_cast %18 : vector<1x512xbf16> to vector<1x1x1x512xbf16>
    tpu.vector_store %arg5[%c0_9, %c0_10, %c0_11, %c0_12], %21 {strides = array<i32>} : memref<1x1x1x512xbf16, #tpu.memory_space<vmem>>, vector<1x1x1x512xbf16>,
    %c0_i32 = arith.constant 0 : i32
    %22 = vector.broadcast %c0_i32 : i32 to vector<1x512xi32>
    %23 = arith.select %14, %12, %22 : vector<1x512xi1>, vector<1x512xi32>
    %c0_13 = arith.constant 0 : index
    %c0_14 = arith.constant 0 : index
    %c0_15 = arith.constant 0 : index
    %c0_16 = arith.constant 0 : index
    %24 = vector.load %arg6[%c0_13, %c0_14, %c0_15, %c0_16] : memref<1x1x1x512xi32, #tpu.memory_space<vmem>>, vector<1x1x1x512xi32>
    %25 = vector.shape_cast %24 : vector<1x1x1x512xi32> to vector<1x512xi32>
    %26 = vector.shape_cast %23 : vector<1x512xi32> to vector<1x1x1x512xi32>
    tpu.vector_store %arg6[%c0_13, %c0_14, %c0_15, %c0_16], %26 {strides = array<i32>} : memref<1x1x1x512xi32, #tpu.memory_space<vmem>>, vector<1x1x1x512xi32>,
    return
  }
  func.func @transform_0(%arg0: i32, %arg1: i32, %arg2: i32) -> (i32, i32, i32) {
    %c0_i32 = arith.constant 0 : i32
    %c0_i32_0 = arith.constant 0 : i32
    return %arg0, %c0_i32, %arg1 : i32, i32, i32
  }
  func.func @transform_1(%arg0: i32, %arg1: i32, %arg2: i32) -> (i32, i32, i32, i32) {
    %c0_i32 = arith.constant 0 : i32
    %c0_i32_0 = arith.constant 0 : i32
    return %arg0, %arg2, %c0_i32, %arg1 : i32, i32, i32, i32
  }
  func.func @transform_2(%arg0: i32, %arg1: i32, %arg2: i32) -> (i32, i32, i32, i32) {
    %c0_i32 = arith.constant 0 : i32
    %c0_i32_0 = arith.constant 0 : i32
    return %arg0, %arg2, %c0_i32, %arg1 : i32, i32, i32, i32
  }
  func.func @transform_3(%arg0: i32, %arg1: i32, %arg2: i32) -> (i32, i32, i32, i32) {
    %c0_i32 = arith.constant 0 : i32
    %c0_i32_0 = arith.constant 0 : i32
    return %arg0, %arg2, %c0_i32, %arg1 : i32, i32, i32, i32
  }
}

</mosaic_0001>

<bundles_post_ra>
// kernel: _xor_refmaxpool_call.1
= control target key start
LH: loop header
LB: loop body
LE: loop exit
PB: predicated region body
PF: predicated region fallthrough
CT: control target
= control target key end

     0   :  { %s1182_s0 = inlined_call_operand.vmem [shape: s8[2,1,1024], index: 0, kind: input, shape index: {}]   ;;  %s1183_s1 = inlined_call_operand.hbm [shape: s8[2,2,16,1024], index: 1, kind: input, shape index: {}]   ;;  %s1184_s2 = inlined_call_operand.vmem [shape: bf16[2,2,1,1024], index: 2, kind: output, shape index: {0}]   ;;  %s1185_s3 = inlined_call_operand.hbm [shape: s32[2,2,1,1024], index: 3, kind: output, shape index: {1}]  }
   0x1   :  { %1195 = sst [smem:[#allocation15_spill]] %s1184_s2 }
   0x2   :  { %9 = vsyncpa [#allocation3], 0 }
   0x3   :  { %11 = vsyncpa [#allocation3 + $0x1], 0 }
   0x4   :  { %12 = vsyncpa [#allocation4], 0 }
   0x5   :  { %14 = vsyncpa [#allocation4 + $0x1], 0  ;;  %s914_s12 = smov 0   ;;  %s916_s13 = smov 0  }
   0x6   :  { %s918_s14 = smov 0   ;;  %s920_s15 = smov 0  }
   0x7   :  { %s922_s16 = smov 0   ;;  %s924_s17 = smov 0  }
   0x8   :  { %s926_s18 = smov 0   ;;  %s928_s19 = smov 0  }
   0x9   :  { %s930_s20 = smov 0   ;;  %s932_s21 = smov 0  }
   0xa LB: > { %1196 = sst [smem:[#allocation8_spill]] %s852_s12  ;;  %s623_s22 = sadd.s32 4294967295, %s888_s21   ;;  %s888_s21 = sphi %s932_s21, %s20_s21   ;;  %s884_s20 = sphi %s930_s20, %s1226_s20   ;;  %s880_s19 = sphi %s928_s19, %s1233_s19   ;;  %s876_s18 = sphi %s926_s18, %s1232_s18   ;;  %s872_s17 = sphi %s924_s17, %s1223_s17   ;;  %s868_s16 = sphi %s922_s16, %s1231_s16   ;;  %s864_s15 = sphi %s920_s15, %s1230_s15   ;;  %s860_s14 = sphi %s918_s14, %s1229_s14   ;;  %s856_s13 = sphi %s916_s13, %s1228_s13   ;;  %s852_s12 = sphi %s914_s12, %s1227_s12  }
   0xb   : > { %1197 = sst [smem:[#allocation9_spill]] %s884_s20  ;;  %s624_s23 = sadd.s32 4294967294, %s888_s21  }
   0xc   : > { %s32_s24 = sadd.s32 1, %s876_s18  ;;  %s35_s25 = sadd.s32 1, %s880_s19 }
   0xd   : > { %p33_p0 = scmp.ge.s32.totalorder %s32_s24, 2  ;;  %s39_s26 = sadd.s32 1, %s884_s20 }
   0xe   : > { %s78_s27 = sadd.s32 1, %s860_s14  ;;  %p85_p1 = scmp.ne.s32.totalorder %s860_s14, %s856_s13 }
   0xf   : > { %s1235_s24 = smov (%p33_p0, %s32_s24), 0  ;;  %s1237_s25 = smov (!%p33_p0, %s35_s25), %s880_s19 }
  0x10   : > { %1198 = sst [smem:[#allocation10_spill]] %s1235_s24  ;;  %s72_s28 = ssub.s32 %s876_s18, %s1235_s24 }
  0x11   : > { %p86_p2 = scmp.eq.s32.totalorder %s888_s21, 0  ;;  %p37_p3 = scmp.ge.s32.totalorder %s1237_s25, 2 }
  0x12   : > { %p91_p4 = scmp.ne.s32.totalorder %s856_s13, %s852_s12  ;;  %p92_p6 = scmp.eq.s32.totalorder %s623_s22, 0 }
  0x13   : > { %p983_p5 = por %p86_p2, %p85_p1  ;;  %s1239_s25 = smov (%p37_p3, %s1237_s25), 0 }
  0x14   : > { %1200 = sst [smem:[#allocation11_spill]] %s1239_s25  ;;  %s1241_s26 = smov (!%p37_p3, %s39_s26), %s884_s20 }
  0x15   : > { %s74_s30 = ssub.s32 %s880_s19, %s1239_s25  ;;  %p992_p7 = por %p92_p6, %p91_p4 }
  0x16   : > { %p41_p8 = scmp.ge.s32.totalorder %s1241_s26, 2  ;;  %p149_p9 = scmp.eq.s32.totalorder %s623_s22, 7 }
  0x17   : > { %p155_p10 = scmp.eq.s32.totalorder %s624_s23, 7  ;;  %p658_p13 = scmp.lt.s32.totalorder %s888_s21, 8 }
  0x18   : > { %s1243_s26 = smov (%p41_p8, %s1241_s26), 0  ;;  %p1001_p11 = por %p149_p9, %p85_p1 }
  0x19   : > { %1202 = sst [smem:[#allocation12_spill]] %s1243_s26  ;;  %p1005_p12 = por %p155_p10, %p91_p4 }
  0x1a   : > { %s1203_s5 = scalar_select %p1001_p11, 1, 0 }
  0x1b   : > { %s1205_s6 = scalar_select %p1005_p12, 1, 0 }
  0x1c   : > { %1204 = sst [smem:[#allocation13_spill]] %s1203_s5  ;;  %s71_s7 = ssub.s32 %s884_s20, %s1243_s26 }
  0x1d   : > { %1206 = sst [smem:[#allocation14_spill]] %s1205_s6  ;;  %s73_s8 = sor.u32 %s72_s28, %s71_s7 }
  0x1e   : > { %s187_s9 = sand.u32 1, %s860_s14   ;;  %s75_s10 = sor.u32 %s74_s30, %s73_s8 }
  0x1f   : > { %p76_p0 = scmp.eq.s32.totalorder %s75_s10, 0  ;;  %s627_s11 = sshll.u32 %s187_s9, 4 }
  0x20   : > { %s628_s22 = sshll.u32 %s880_s19, 2  ;;  %s629_s25 = sshll.u32 %s876_s18, 4 }
  0x21   : > { %s1015_s23 = scalar_select %p76_p0, %s860_s14, %s78_s27  }
  0x22   : > { %s630_s24 = sshll.u32 %s884_s20, 5  ;;  %s196_s12 = sadd.s32 %s629_s25, %s628_s22 }
  0x23   : > { %s191_s5 = scalar_lea.vmem [#allocation2], %s627_s11  ;;  %s198_s6 = sadd.s32 %s630_s24, %s196_s12 }
  0x24   : > { %s203_s2 = sshll.u32 %s191_s5, 4  ;;  %s631_s26 = sshll.u32 %s198_s6, 1  ;;  %s204_s2 = int_to_ptr.vmem [resolvable:$true] %s203_s2 }
  0x25   : > { %p651_p1 = pnand %p658_p13, %p983_p5  ;;  %s200_s7 = scalar_lea.hbm %s1183_s1, %s631_s26 }
  0x26   : > { %s201_s8 = sshll.u32 %s200_s7, 4  ;;  %p632_p2 = scmp.ge.s32.totalorder %s888_s21, 1  ;;  %s202_s8 = int_to_ptr.hbm [resolvable:$true] %s201_s8 }
  0x27   : > { %s188_s27 = scalar_lea.sflag [#allocation3], %s187_s9  ;;  %s890_s10 = smov 256  }
  0x28   : > { %s891_s20 = smov 128   ;;  %s892_s25 = smov 8  }
  0x29   : > { %653 = dma.hbm_to_vmem [thread:$0]  (!%p651_p1), %s202_s8, 256, %s204_s2, %s188_s27, %s890_s10, %s891_s20, %s892_s25  }
  0x2a   : > { %p211_p3 = scmp.lt.s32.totalorder %s888_s21, 9 }
  0x2c   : > { %p212_p4 = pnand %p632_p2, %p211_p3 }
  0x2d   : > { %s1029_s12 = sand.u32 (!%p212_p4), 1, %s856_s13  }
  0x2e   : > { %215 = sbr.rel (%p212_p4) target bundleno = 96 (0x60), region = 28  ;;  %s633_s24 = sshll.u32 (!%p212_p4), %s1029_s12, 4 }
  0x2f   : > { %s218_s29 = scalar_lea.sflag (!%p212_p4), [#allocation3], %s1029_s12  ;;  %s221_s26 = scalar_lea.vmem (!%p212_p4), [#allocation2], %s633_s24 }
  0x33   : > { %843 = dma.done.wait (%p992_p7), %s218_s29, 256  }
  0x34   : > { %845 = vsyncadd (%p992_p7), %s218_s29, 4294967040  ;;  %s1038_s2 = sshll.u32 %s868_s16, 2  ;;  %p266_p5 = scmp.lt.s32.totalorder %s872_s17, 1  ;;  %v318_v0 = vlaneseq  ;;  %v292_v1 = vld [vmem:[%s221_s26] sm:$0xff]  ;;  %v293_v5 = vld [vmem:[%s221_s26 + $0x8] sm:$0xff]  ;;  %vm1194_vm8 = vcmask 1040384  }
  0x35   : > { %p268_p6 = scmp.lt.s32.totalorder %s1038_s2, 7  ;;  %v294_v7 = vunpack.c.0.s8 %v292_v1  ;;  %v295_v8 = vunpack.c.1.s8 %v292_v1  ;;  %v296_v9 = vunpack.c.2.s8 %v292_v1  ;;  %v297_v10 = vunpack.c.3.s8 %v292_v1  ;;  %p278_p7 = scmp.lt.s32.totalorder %s864_s15, 1 }
  0x36   : > { %s1043_s20 = scalar_select %p266_p5, %s872_s17, 1  ;;  %v319_v6 = vshrl.u32 %v318_v0, 7  ;;  %v298_v15 = vunpack.c.0.s8 %v293_v5  ;;  %v299_v16 = vunpack.c.1.s8 %v293_v5  ;;  %v300_v17 = vunpack.c.2.s8 %v293_v5 }
  0x37   : > { %s1046_s5 = scalar_select %p268_p6, %s1038_s2, 7  ;;  %v301_v18 = vunpack.c.3.s8 %v293_v5  ;;  %vm400_vm13 = vsmask.f32 256  ;;  %vm402_vm14 = vcmask 1041409   ;;  %vm403_vm15 = vsmask.f32 1280 }
  0x38   : > { %s636_s6 = sshll.u32 %s1043_s20, 3  ;;  %v320_v23 = vadd.s32 8, %v319_v6  ;;  %s642_s28 = sshll.u32 %s864_s15, 3  ;;  %v893_v63 = vmov -1.0  }
  0x39   : > { %s271_s9 = sadd.s32 %s636_s6, %s1046_s5  ;;  %s643_s7 = sshll.u32 %s872_s17, 4 }
  0x3a   : > { %s272_s22 = scalar_lea.vmem %s1182_s0, %s271_s9  ;;  %s634_s8 = sshll.u32 %s1029_s12, 2 }
  0x3b   : > { %v289_v2 = vld [vmem:[%s272_s22] sm:$0xf]  ;;  %s1056_s16 = scalar_select %p278_p7, %s864_s15, 1 }
  0x3c   : > { %v290_v3 = vunpack.c.0.s8 %v289_v2  ;;  %v291_v4 = vunpack.c.1.s8 %v289_v2  ;;  %s460_s15 = sadd.s32 %s642_s28, %s1038_s2  ;;  %s639_s27 = sshll.u32 %s1043_s20, 4 }
  0x3d   : > { %s638_s30 = sshll.u32 %s1056_s16, 3  ;;  %s1077_s17 = sadd.s32 %s643_s7, %s460_s15 }
  0x3e   : > { %v302_v11 = vperm.slane %v290_v3, 0  ;;  %v303_v12 = vperm.slane %v290_v3, 4  ;;  %v304_v13 = vperm.slane %v291_v4, 0  ;;  %v305_v14 = vperm.slane %v291_v4, 4  ;;  %s283_s10 = sadd.s32 %s638_s30, %s1046_s5  ;;  %s463_s26 = scalar_lea.hbm %s1185_s3, %s1077_s17 }
  0x3f   : > { %s285_s25 = sadd.s32 %s639_s27, %s283_s10  ;;  %s264_s2 = scalar_lea.vmem [#allocation5], %s634_s8 }
  0x40   : > { %v306_v19 = vperm.slane %v302_v11, 0  ;;  %v307_v20 = vperm.slane %v303_v12, 0  ;;  %v308_v21 = vperm.slane %v304_v13, 0  ;;  %v309_v22 = vperm.slane %v305_v14, 0  ;;  %s465_s20 = sshll.u32 %s264_s2, 4  ;;  %s1215_s9 = sld [smem:[#allocation15_spill]]  ;;  %s466_s20 = int_to_ptr.vmem [resolvable:$true] %s465_s20 }
  0x41   : > { %s1121_s11 = sshll.u32 %s463_s26, 4  ;;  %s445_s16 = scalar_lea.sflag [#allocation4], %s1029_s12  ;;  %s468_s11 = int_to_ptr.hbm [resolvable:$true] %s1121_s11 }
  0x42   : > { %vm310_vm0 = vcmp.eq.s32.totalorder %v294_v7, %v306_v19  ;;  %vm311_vm1 = vcmp.eq.s32.totalorder %v295_v8, %v307_v20  ;;  %vm312_vm2 = vcmp.eq.s32.totalorder %v296_v9, %v308_v21  ;;  %vm313_vm3 = vcmp.eq.s32.totalorder %v297_v10, %v309_v22  ;;  %s788_s28 = sshra.s32 %s468_s11, 4  ;;  %s794_s8 = scalar_lea.hbm %s1185_s3, 32  ;;  %s789_s28 = int_to_ptr.hbm [resolvable:$true] %s788_s28 }
  0x43   : > { %vm314_vm4 = vcmp.eq.s32.totalorder %v298_v15, %v306_v19  ;;  %vm315_vm5 = vcmp.eq.s32.totalorder %v299_v16, %v307_v20  ;;  %vm316_vm6 = vcmp.eq.s32.totalorder %v300_v17, %v308_v21  ;;  %vm317_vm7 = vcmp.eq.s32.totalorder %v301_v18, %v309_v22  ;;  %s790_s30 = scalar_lea.hbm %s789_s28, 4  ;;  %p795_p13 = scmp.lt.s32.totalorder %s789_s28, %s1185_s3 }
  0x44   : > { %v321_v24 = vsel %vm310_vm0, %v319_v6, 16  ;;  %v322_v25 = vsel %vm311_vm1, %v319_v6, 16  ;;  %v323_v26 = vsel %vm312_vm2, %v319_v6, 16  ;;  %v324_v27 = vsel %vm313_vm3, %v319_v6, 16  ;;  %p791_p8 = scmp.ne.s32.totalorder %s789_s28, %s790_s30  ;;  %p796_p0 = scmp.lt.s32.totalorder %s794_s8, %s790_s30 }
  0x45   : > { %v325_v28 = vsel %vm314_vm4, %v320_v23, 16  ;;  %v326_v29 = vsel %vm315_vm5, %v320_v23, 16  ;;  %v327_v30 = vsel %vm316_vm6, %v320_v23, 16  ;;  %v328_v31 = vsel %vm317_vm7, %v320_v23, 16 }
  0x46   : > { %vm329_vm9 = vcmp.lt.s32.totalorder %v321_v24, %v325_v28  ;;  %vm340_vm10 = vcmp.lt.s32.totalorder %v322_v25, %v326_v29  ;;  %vm351_vm11 = vcmp.lt.s32.totalorder %v323_v26, %v327_v30  ;;  %vm362_vm12 = vcmp.lt.s32.totalorder %v324_v27, %v328_v31  ;;  %s1113_s4 = scalar_lea.vmem %s1215_s9, %s285_s25  ;;  %p792_p9 = pnand %p791_p8, %p1001_p11 }
  0x47   : > { %v330_v32 = vsel %vm329_vm9, %v321_v24, %v325_v28  ;;  %v341_v33 = vsel %vm340_vm10, %v322_v25, %v326_v29  ;;  %v352_v34 = vsel %vm351_vm11, %v323_v26, %v327_v30  ;;  %v363_v35 = vsel %vm362_vm12, %v324_v27, %v328_v31  ;;  %vm1062_vm11 = vmand %vm1194_vm8, %vm400_vm13  ;;  %v414_v22 = vld [vmem:[%s1113_s4] sm:$0xf]  ;;  %p797_p1 = por %p796_p0, %p795_p13 }
  0x48   : > { %v331_v36 = vrot.slane %v330_v32, 4  ;;  %v342_v37 = vrot.slane %v341_v33, 4  ;;  %v353_v38 = vrot.slane %v352_v34, 4  ;;  %v364_v39 = vrot.slane %v363_v35, 4  ;;  %vm1070_vm12 = vmand %vm402_vm14, %vm403_vm15  ;;  %p793_p10 = pneg %p792_p9 }
  0x49   : > { %vm392_vm4 = vcmask 1042434   ;;  %vm407_vm5 = vsmask.f32 2304  ;;  %vm410_vm13 = vcmask 1043459   ;;  %vm405_vm14 = vmor %vm1070_vm12, %vm1062_vm11  ;;  %vm429_vm12 = vcmp.lt.s32.totalorder %v318_v0, 512 }
  0x4a   : > { %vm332_vm0 = vcmp.lt.s32.totalorder %v330_v32, %v331_v36  ;;  %vm343_vm1 = vcmp.lt.s32.totalorder %v341_v33, %v342_v37  ;;  %vm354_vm2 = vcmp.lt.s32.totalorder %v352_v34, %v353_v38  ;;  %vm365_vm3 = vcmp.lt.s32.totalorder %v363_v35, %v364_v39  ;;  %vm1085_vm15 = vmand %vm392_vm4, %vm407_vm5  ;;  %p798_p2 = pnand %p797_p1, %p793_p10 }
  0x4b   : > { %v333_v40 = vsel %vm332_vm0, %v330_v32, %v331_v36  ;;  %v344_v41 = vsel %vm343_vm1, %v341_v33, %v342_v37  ;;  %v355_v42 = vsel %vm354_vm2, %v352_v34, %v353_v38  ;;  %v366_v43 = vsel %vm365_vm3, %v363_v35, %v364_v39  ;;  %vm1104_vm5 = vmor %vm1085_vm15, %vm405_vm14 }
  0x4c   : > { %v334_v44 = vrot.slane %v333_v40, 2  ;;  %v345_v45 = vrot.slane %v344_v41, 2  ;;  %v356_v46 = vrot.slane %v355_v42, 2  ;;  %v367_v47 = vrot.slane %v366_v43, 2 }
  0x4d   : > { %vm411_vm0 = vsmask.f32 3328 }
  0x4e   : > { %vm335_vm6 = vcmp.lt.s32.totalorder %v333_v40, %v334_v44  ;;  %vm346_vm7 = vcmp.lt.s32.totalorder %v344_v41, %v345_v45  ;;  %vm357_vm9 = vcmp.lt.s32.totalorder %v355_v42, %v356_v46  ;;  %vm368_vm10 = vcmp.lt.s32.totalorder %v366_v43, %v367_v47  ;;  %vm1117_vm11 = vmand %vm410_vm13, %vm411_vm0 }
  0x4f   : > { %v336_v49 = vsel %vm335_vm6, %v333_v40, %v334_v44  ;;  %v347_v50 = vsel %vm346_vm7, %v344_v41, %v345_v45  ;;  %v358_v51 = vsel %vm357_vm9, %v355_v42, %v356_v46  ;;  %v369_v52 = vsel %vm368_vm10, %v366_v43, %v367_v47  ;;  %vm413_vm0 = vmor %vm1117_vm11, %vm1104_vm5 }
  0x50   : > { %v337_v54 = vrot.slane %v336_v49, 1  ;;  %v348_v55 = vrot.slane %v347_v50, 1  ;;  %v359_v56 = vrot.slane %v358_v51, 1  ;;  %v370_v57 = vrot.slane %v369_v52, 1 }
  0x52   : > { %vm338_vm1 = vcmp.lt.s32.totalorder %v336_v49, %v337_v54  ;;  %vm349_vm2 = vcmp.lt.s32.totalorder %v347_v50, %v348_v55  ;;  %vm360_vm3 = vcmp.lt.s32.totalorder %v358_v51, %v359_v56  ;;  %vm371_vm6 = vcmp.lt.s32.totalorder %v369_v52, %v370_v57 }
  0x53   : > { %v339_v58 = vsel %vm338_vm1, %v336_v49, %v337_v54  ;;  %v350_v59 = vsel %vm349_vm2, %v347_v50, %v348_v55  ;;  %v361_v60 = vsel %vm360_vm3, %v358_v51, %v359_v56  ;;  %v372_v61 = vsel %vm371_vm6, %v369_v52, %v370_v57 }
  0x54   : > { %vm373_vm7 = vcmp.lt.s32.totalorder %v339_v58, 16  ;;  %vm374_vm9 = vcmp.lt.s32.totalorder %v350_v59, 16  ;;  %vm375_vm10 = vcmp.lt.s32.totalorder %v361_v60, 16  ;;  %vm376_vm8 = vcmp.lt.s32.totalorder %v372_v61, 16 }
  0x55   : > { %v377_v1 = vsel %vm373_vm7, 1.0, %v893_v63  ;;  %v378_v2 = vsel %vm374_vm9, 1.0, %v893_v63  ;;  %v379_v3 = vsel %vm375_vm10, 1.0, %v893_v63  ;;  %v380_v4 = vsel %vm376_vm8, 1.0, %v893_v63 }
  0x56   : > { %v381_v5 = vpack.c.bf16 %v378_v2, %v377_v1  ;;  %v382_v6 = vpack.c.bf16 %v380_v4, %v379_v3  ;;  %v417_v7 = vsel %vm373_vm7, %v339_v58, 0  ;;  %v418_v8 = vsel %vm374_vm9, %v350_v59, 0 }
  0x57   : > { %vm396_vm1 = vcmask 1041408   ;;  %v419_v10 = vsel %vm375_vm10, %v361_v60, 0  ;;  %v420_v11 = vsel %vm376_vm8, %v372_v61, 0  ;;  %v421_v12 = vrot.slane %v418_v8, 7 }
  0x58   : > { %v422_v14 = vrot.slane %v419_v10, 6  ;;  %v423_v15 = vrot.slane %v420_v11, 5  ;;  %v385_v16 = vrot.slane %v381_v5, 3  ;;  %v386_v17 = vrot.slane %v382_v6, 6 }
  0x59   : > { %vm1218_vm8 = vcmask 1040384   ;;  %v387_v19 = vrot.slane %v382_v6, 1 }
  0x5a   : > { %v424_v18 = vsel %vm1218_vm8, %v417_v7, %v421_v12  ;;  %v425_v20 = vsel %vm392_vm4, %v422_v14, %v423_v15  ;;  %vm1220_vm13 = vmmov %vm1218_vm8 }
  0x5b   : > { %v391_v21 = vsel %vm1220_vm13, %v381_v5, %v385_v16  ;;  %v426_v23 = vsel %vm396_vm1, %v424_v18, %v425_v20  ;;  %v395_v24 = vsel %vm392_vm4, %v386_v17, %v387_v19 }
  0x5c   : > { %431 = vst.msk [vmem:[%s264_s2] sm:$0xf] %vm429_vm12, %v426_v23  ;;  %v397_v0 = vsel %vm396_vm1, %v391_v21, %v395_v24 }
  0x5d   : > { %v415_v25 = vsel %vm413_vm0, %v397_v0, %v414_v22 }
  0x5e   : > { %801 = shalt.err (!%p798_p2)
}
  0x5f   : > { %648 = dma.vmem_to_hbm [thread:$0]  (%p1001_p11), %s466_s20, 64, %s468_s11, %s445_s16   ;;  %416 = vst [vmem:[%s1113_s4] sm:$0xf] %v415_v25 }
  0x60 PF: > { %s1221_s12 = sld [smem:[#allocation8_spill]]  ;;  %p659_p3 = scmp.ge.s32.totalorder %s888_s21, 2 }
  0x62   : > { %p655_p4 = pnand %p659_p3, %p1005_p12 }
  0x64   : > { %p656_p5 = pneg %p655_p4 }
  0x66   : > { %s494_s25 = sand.u32 1, %s1221_s12  }
  0x67   : > { %s495_s24 = scalar_lea.sflag [#allocation4], %s494_s25 }
  0x68   : > { %847 = dma.done.wait (%p656_p5), %s495_s24, 64  }
  0x69   : > { %849 = vsyncadd (%p656_p5), %s495_s24, 4294967232  ;;  %s20_s21 = sadd.s32 1, %s888_s21   ;;  %s1223_s17 = sld [smem:[#allocation9_spill]] }
  0x6a   : > { %p17_p6 = scmp.ge.s32.totalorder %s20_s21, 10   ;;  %s1224_s29 = sld [smem:[#allocation10_spill]] }
  0x6b   : > { %s1225_s26 = sld [smem:[#allocation11_spill]]  ;;  %s1227_s12 = smov %s856_s13 }
  0x6c   : > { %s1226_s20 = sld [smem:[#allocation12_spill]]  ;;  %s1228_s13 = smov %s860_s14 }
  0x6d   : > { %s1229_s14 = smov %s1015_s23  ;;  %s1230_s15 = smov %s876_s18 }
  0x6e   : > { %s1231_s16 = smov %s880_s19  ;;  %19 = sbr.rel (!%p17_p6) target bundleno = 10 (0xa), region = 88 }
  0x70   : > { %s1232_s18 = smov %s1224_s29 }
  0x71   : > { %s1233_s19 = smov %s1225_s26 }
  0x73   :  { %501 = vsyncpa [#allocation3], 1 }
  0x74   :  { %503 = vsyncpa [#allocation3 + $0x1], 1 }
  0x75   :  { %504 = vsyncpa [#allocation4], 1 }
  0x76   :  { %506 = vsyncpa [#allocation4 + $0x1], 1 }

</bundles_post_ra>
